<compile_context>
chip_gen: v7x
topology: tpu7x:2x2x1
jax: 0.10.0
libtpu: 0.0.40
codegen_flags: <defaults>
</compile_context>

<pallas_src>
import functools

import jax
import jax.numpy as jnp
from jax.experimental import pallas as pl
from jax.experimental.pallas import tpu as pltpu

EOS = 1e-10
_VMEM_LIMIT = 48 * 1024 * 1024  # fits every generation (v7x total VMEM = 64 MiB)


def _round_up(x, m):
    return ((x + m - 1) // m) * m


# ----------------------------------------------------------------------------
# Kernel 1: fused node score
#   score[n] = relu(x[n] @ W1 + b1) . (w2[:H] + w2[H:]) + b2
# The (TM,1)-output matmul is replaced by a VPU multiply + lane reduce.
# ----------------------------------------------------------------------------
def _node_score_kernel(x_ref, w1_ref, b1_ref, wsum_ref, b2_ref, o_ref):
    emb = jnp.dot(x_ref[...], w1_ref[...], preferred_element_type=jnp.float32)
    emb = jnp.maximum(emb + b1_ref[...], 0.0)
    o_ref[...] = jnp.sum(emb * wsum_ref[...], axis=-1, keepdims=True) + b2_ref[0, 0]


def node_scores(features, w1, b1, wsum, b2, *, tm=256):
    N, D = features.shape
    H = w1.shape[1]
    TM = min(tm, _round_up(N, 8))
    NP = _round_up(N, TM)
    if NP != N:
        features = jnp.pad(features, ((0, NP - N), (0, 0)))
    out = pl.pallas_call(
        _node_score_kernel,
        out_shape=jax.ShapeDtypeStruct((NP, 1), jnp.float32),
        grid=(NP // TM,),
        in_specs=[
            pl.BlockSpec((TM, D), lambda i: (i, 0)),
            pl.BlockSpec((D, H), lambda i: (0, 0)),
            pl.BlockSpec((1, H), lambda i: (0, 0)),
            pl.BlockSpec((1, H), lambda i: (0, 0)),
            pl.BlockSpec((1, 1), lambda i: (0, 0)),
        ],
        out_specs=pl.BlockSpec((TM, 1), lambda i: (i, 0)),
        compiler_params=pltpu.CompilerParams(
            dimension_semantics=("parallel",), vmem_limit_bytes=_VMEM_LIMIT),
    )(features, w1, b1.reshape(1, H), wsum.reshape(1, H), b2.reshape(1, 1))
    return out[:N, 0]


# ----------------------------------------------------------------------------
# Kernel 2: gumbel gate over edges (lane-dense, row-tiled)
#   raw = (score[u] + score[v]) / 2     (b2 already folded into score)
#   eps = (bias - (1-bias)) * rand + (1-bias)
#   lp  = sigmoid((log(eps) - log(1-eps) + raw) / T)
# ----------------------------------------------------------------------------
def _edge_gate_kernel(temperature, bias, su_ref, sv_ref, rnd_ref, lp_ref):
    raw = 0.5 * (su_ref[...] + sv_ref[...])
    eps = (bias - (1.0 - bias)) * rnd_ref[...] + (1.0 - bias)
    gate = jnp.log(eps) - jnp.log(1.0 - eps)
    lp_ref[...] = jax.nn.sigmoid((gate + raw) / temperature)


def edge_gate(s_u, s_v, rnd, *, temperature, bias, tr=64):
    E = s_u.shape[0]
    LANES = 128
    rows = _round_up(pl.cdiv(E, LANES), 8)
    TR = min(tr, rows)
    rows = _round_up(rows, TR)
    EP = rows * LANES

    def to2d(x):
        return jnp.pad(x, (0, EP - E)).reshape(rows, LANES)

    kern = functools.partial(_edge_gate_kernel, float(temperature), float(bias))
    lp2 = pl.pallas_call(
        kern,
        out_shape=jax.ShapeDtypeStruct((rows, LANES), jnp.float32),
        grid=(rows // TR,),
        in_specs=[pl.BlockSpec((TR, LANES), lambda i: (i, 0))] * 3,
        out_specs=pl.BlockSpec((TR, LANES), lambda i: (i, 0)),
        compiler_params=pltpu.CompilerParams(
            dimension_semantics=("parallel",), vmem_limit_bytes=_VMEM_LIMIT),
    )(to2d(s_u), to2d(s_v), to2d(rnd))
    return lp2.reshape(EP)[:E]


# ----------------------------------------------------------------------------
# Kernel 3a: inverse sqrt degrees (row-tiled full-row sums)
#   inv_lp[i] = 1/(sqrt(rowsum(A_lp_raw)[i] + 1) + EOS)
#   inv_hp[i] = 1/(sqrt(rowsum(mask - A_lp_raw)[i] + 1) + EOS)
# ----------------------------------------------------------------------------
def _inv_degree_kernel(alp_ref, mask_ref, invlp_ref, invhp_ref):
    s_lp = jnp.sum(alp_ref[...], axis=-1, keepdims=True)
    s_mk = jnp.sum(mask_ref[...], axis=-1, keepdims=True)
    invlp_ref[...] = 1.0 / (jnp.sqrt(s_lp + 1.0) + EOS)
    invhp_ref[...] = 1.0 / (jnp.sqrt(s_mk - s_lp + 1.0) + EOS)


# ----------------------------------------------------------------------------
# Kernel 3b: normalized adjacencies (row-tiled)
#   adj_lp = D_lp^-1/2 (A_lp_raw + I) D_lp^-1/2
#   adj_hp = I - [D_hp^-1/2 (mask - A_lp_raw + I) D_hp^-1/2] * mask * alpha
# Row scaling uses the in-tile row sums; column scaling uses the precomputed
# (1, N) inverse vectors (elementwise broadcast multiply, no matmul).
# ----------------------------------------------------------------------------
def _adj_kernel(alpha, alp_ref, mask_ref, invlp_col_ref, invhp_col_ref,
                olp_ref, ohp_ref):
    t = pl.program_id(0)
    TN, NP = alp_ref.shape
    row = jax.lax.broadcasted_iota(jnp.int32, (TN, NP), 0) + t * TN
    col = jax.lax.broadcasted_iota(jnp.int32, (TN, NP), 1)
    diag = jnp.where(row == col, 1.0, 0.0)

    alp_raw = alp_ref[...]
    mask = mask_ref[...]

    s_lp = jnp.sum(alp_raw, axis=-1, keepdims=True)
    s_mk = jnp.sum(mask, axis=-1, keepdims=True)
    inv_lp_row = 1.0 / (jnp.sqrt(s_lp + 1.0) + EOS)
    inv_hp_row = 1.0 / (jnp.sqrt(s_mk - s_lp + 1.0) + EOS)

    a_lp = alp_raw + diag
    olp_ref[...] = (inv_lp_row * a_lp) * invlp_col_ref[...]

    a_hp = (mask - alp_raw) + diag
    nhp = (inv_hp_row * a_hp) * invhp_col_ref[...]
    ohp_ref[...] = diag - nhp * mask * alpha


def adj_from_weights(adj_lp_raw, mask, *, alpha, tn=256):
    NP = adj_lp_raw.shape[0]
    TN = min(tn, NP)
    while NP % TN != 0:
        TN //= 2
    grid = (NP // TN,)
    cp = pltpu.CompilerParams(dimension_semantics=("parallel",),
                              vmem_limit_bytes=_VMEM_LIMIT)

    inv_lp, inv_hp = pl.pallas_call(
        _inv_degree_kernel,
        out_shape=(jax.ShapeDtypeStruct((NP, 1), jnp.float32),
                   jax.ShapeDtypeStruct((NP, 1), jnp.float32)),
        grid=grid,
        in_specs=[pl.BlockSpec((TN, NP), lambda i: (i, 0))] * 2,
        out_specs=(pl.BlockSpec((TN, 1), lambda i: (i, 0)),
                   pl.BlockSpec((TN, 1), lambda i: (i, 0))),
        compiler_params=cp,
    )(adj_lp_raw, mask)

    inv_lp_col = inv_lp.reshape(1, NP)  # row-major reshape: no data movement
    inv_hp_col = inv_hp.reshape(1, NP)

    kern = functools.partial(_adj_kernel, float(alpha))
    adj_lp, adj_hp = pl.pallas_call(
        kern,
        out_shape=(jax.ShapeDtypeStruct((NP, NP), jnp.float32),
                   jax.ShapeDtypeStruct((NP, NP), jnp.float32)),
        grid=grid,
        in_specs=[
            pl.BlockSpec((TN, NP), lambda i: (i, 0)),
            pl.BlockSpec((TN, NP), lambda i: (i, 0)),
            pl.BlockSpec((1, NP), lambda i: (0, 0)),
            pl.BlockSpec((1, NP), lambda i: (0, 0)),
        ],
        out_specs=(pl.BlockSpec((TN, NP), lambda i: (i, 0)),
                   pl.BlockSpec((TN, NP), lambda i: (i, 0))),
        compiler_params=cp,
    )(adj_lp_raw, mask, inv_lp_col, inv_hp_col)
    return adj_lp, adj_hp


# ----------------------------------------------------------------------------
# Full forward (JAX glue around the Pallas kernels)
# ----------------------------------------------------------------------------
def edge_discriminator_forward(params, features, edges, rng_key, *,
                               nnodes, alpha, temperature=1.0, bias=0.0 + 0.0001):
    w1, b1, w2, b2 = params["w1"], params["b1"], params["w2"], params["b2"]
    H = w1.shape[1]

    # get_node_embedding + the linear part of get_edge_weight, fused:
    # score[n] = relu(x[n]@W1+b1) @ (w2[:H]+w2[H:]) + b2
    wsum = (w2[:H] + w2[H:]).astype(jnp.float32)
    score = node_scores(features, w1, b1, wsum, jnp.asarray(b2, jnp.float32))  # (N,)

    src, dst = edges[0], edges[1]
    E = src.shape[0]
    s_u = jnp.take(score, src)   # scalar-per-edge gather (cheap XLA glue)
    s_v = jnp.take(score, dst)
    rnd = jax.random.uniform(rng_key, (E,), dtype=jnp.float32)  # torch.rand analogue

    weights_lp = edge_gate(s_u, s_v, rnd, temperature=temperature, bias=bias)
    weights_hp = 1.0 - weights_lp

    # weight_to_adj (dense branch). Scatter is XLA glue; node count padded to a
    # lane multiple so the adjacency kernels stay (8,128)-aligned.
    NP = _round_up(max(nnodes, 128), 128)
    adj_lp_raw = jnp.zeros((NP, NP), jnp.float32).at[src, dst].set(weights_lp)
    mask = jnp.zeros((NP, NP), jnp.float32).at[src, dst].set(1.0)
    # adj_hp_raw never materialized: A_hp_raw == mask - A_lp_raw (w_hp = 1 - w_lp)

    adj_lp, adj_hp = adj_from_weights(adj_lp_raw, mask, alpha=alpha)
    return (adj_lp[:nnodes, :nnodes], adj_hp[:nnodes, :nnodes],
            weights_lp, weights_hp)


# ----------------------------------------------------------------------------
# Deterministic parameter init + demo
# ----------------------------------------------------------------------------
def init_params(key, input_dim, hidden_dim):
    k1, k2 = jax.random.split(key)
    scale1 = 1.0 / jnp.sqrt(jnp.float32(input_dim))
    scale2 = 1.0 / jnp.sqrt(jnp.float32(2 * hidden_dim))
    return {
        # nn.Linear(input_dim, hidden_dim)
        "w1": jax.random.normal(k1, (input_dim, hidden_dim), jnp.float32) * scale1,
        "b1": jnp.zeros((hidden_dim,), jnp.float32),
        # nn.Linear(2*hidden_dim, 1)
        "w2": jax.random.normal(k2, (2 * hidden_dim,), jnp.float32) * scale2,
        "b2": jnp.zeros((), jnp.float32),
    }


if __name__ == "__main__":
    key = jax.random.PRNGKey(0)
    nnodes, input_dim, hidden_dim, n_edges = 64, 32, 128, 256
    alpha, temperature, bias = 0.1, 1.0, 0.0 + 0.0001

    k_feat, k_src, k_dst, k_par, k_gum = jax.random.split(key, 5)
    features = jax.random.normal(k_feat, (nnodes, input_dim), jnp.float32)
    src = jax.random.randint(k_src, (n_edges,), 0, nnodes, dtype=jnp.int32)
    dst = jax.random.randint(k_dst, (n_edges,), 0, nnodes, dtype=jnp.int32)
    edges = jnp.stack([src, dst])                                # (2, E)

    params = init_params(k_par, input_dim, hidden_dim)

    adj_lp, adj_hp, weights_lp, weights_hp = edge_discriminator_forward(
        params, features, edges, k_gum,
        nnodes=nnodes, alpha=alpha, temperature=temperature, bias=bias)

    jax.block_until_ready((adj_lp, adj_hp, weights_lp, weights_hp))
    assert adj_lp.shape == (nnodes, nnodes)
    assert adj_hp.shape == (nnodes, nnodes)
    assert weights_lp.shape == (n_edges,)
    assert weights_hp.shape == (n_edges,)
    print("KERNEL_OK")
</pallas_src>

<mosaic_0001>
module attributes {stable_mosaic.version = 11 : i64} {
  func.func @_node_score_kernel(%arg0: i32, %arg1: memref<64x32xf32, #tpu.memory_space<vmem>>, %arg2: memref<32x128xf32, #tpu.memory_space<vmem>>, %arg3: memref<1x128xf32, #tpu.memory_space<vmem>>, %arg4: memref<1x128xf32, #tpu.memory_space<vmem>>, %arg5: memref<1x1xf32, #tpu.memory_space<vmem>>, %arg6: memref<64x1xf32, #tpu.memory_space<vmem>>) attributes {dimension_semantics = [#tpu.dimension_semantics<parallel>], iteration_bounds = array<i64: 1>, scalar_prefetch = 0 : i64, scratch_operands = 0 : i64, tpu.core_type = #tpu.core_type<tc>, window_params = [{transform_indices = @transform_0, window_bounds = array<i64: 64, 32>}, {pipeline_mode = #tpu.pipeline_mode<synchronous>, transform_indices = @transform_1, window_bounds = array<i64: 32, 128>}, {pipeline_mode = #tpu.pipeline_mode<synchronous>, transform_indices = @transform_2, window_bounds = array<i64: 1, 128>}, {pipeline_mode = #tpu.pipeline_mode<synchronous>, transform_indices = @transform_3, window_bounds = array<i64: 1, 128>}, {pipeline_mode = #tpu.pipeline_mode<synchronous>, transform_indices = @transform_4, window_bounds = array<i64: 1, 1>}, {transform_indices = @transform_5, window_bounds = array<i64: 64, 1>}]} {
    %c0 = arith.constant 0 : index
    %c0_0 = arith.constant 0 : index
    %0 = vector.load %arg1[%c0, %c0_0] : memref<64x32xf32, #tpu.memory_space<vmem>>, vector<64x32xf32>
    %c0_1 = arith.constant 0 : index
    %c0_2 = arith.constant 0 : index
    %1 = vector.load %arg2[%c0_1, %c0_2] : memref<32x128xf32, #tpu.memory_space<vmem>>, vector<32x128xf32>
    %cst = arith.constant dense<0.000000e+00> : vector<64x128xf32>
    %2 = tpu.matmul %0, %1, %cst {dimension_numbers = #tpu.dot_dimension_numbers<[1], [0], [0], [1], [0, 0, 1, 1], [], []>} : vector<64x32xf32>, vector<32x128xf32>, vector<64x128xf32> -> vector<64x128xf32>
    %c0_3 = arith.constant 0 : index
    %c0_4 = arith.constant 0 : index
    %3 = vector.load %arg3[%c0_3, %c0_4] : memref<1x128xf32, #tpu.memory_space<vmem>>, vector<1x128xf32>
    %4 = vector.broadcast %3 : vector<1x128xf32> to vector<64x128xf32>
    %5 = arith.addf %2, %4 : vector<64x128xf32>
    %cst_5 = arith.constant 0.000000e+00 : f32
    %6 = vector.broadcast %cst_5 : f32 to vector<64x128xf32>
    %7 = arith.maximumf %5, %6 : vector<64x128xf32>
    %c0_6 = arith.constant 0 : index
    %c0_7 = arith.constant 0 : index
    %8 = vector.load %arg4[%c0_6, %c0_7] : memref<1x128xf32, #tpu.memory_space<vmem>>, vector<1x128xf32>
    %9 = vector.broadcast %8 : vector<1x128xf32> to vector<64x128xf32>
    %10 = arith.mulf %7, %9 : vector<64x128xf32>
    %cst_8 = arith.constant dense<0.000000e+00> : vector<64xf32>
    %11 = vector.multi_reduction <add>, %10, %cst_8 [1] : vector<64x128xf32> to vector<64xf32>
    %12 = vector.shape_cast %11 : vector<64xf32> to vector<64x1xf32>
    %c0_9 = arith.constant 0 : index
    %c0_10 = arith.constant 0 : index
    %13 = vector.load %arg5[%c0_9, %c0_10] : memref<1x1xf32, #tpu.memory_space<vmem>>, vector<1x1xf32>
    %14 = vector.extract %13[0, 0] : f32 from vector<1x1xf32>
    %15 = vector.broadcast %14 : f32 to vector<64x1xf32>
    %16 = arith.addf %12, %15 : vector<64x1xf32>
    %c0_11 = arith.constant 0 : index
    %c0_12 = arith.constant 0 : index
    %17 = vector.load %arg6[%c0_11, %c0_12] : memref<64x1xf32, #tpu.memory_space<vmem>>, vector<64x1xf32>
    tpu.vector_store %arg6[%c0_11, %c0_12], %16 {strides = array<i32>} : memref<64x1xf32, #tpu.memory_space<vmem>>, vector<64x1xf32>,
    return
  }
  func.func @transform_0(%arg0: i32) -> (i32, i32) {
    %c0_i32 = arith.constant 0 : i32
    %c0_i32_0 = arith.constant 0 : i32
    return %arg0, %c0_i32 : i32, i32
  }
  func.func @transform_1(%arg0: i32) -> (i32, i32) {
    %c0_i32 = arith.constant 0 : i32
    %c0_i32_0 = arith.constant 0 : i32
    %c0_i32_1 = arith.constant 0 : i32
    return %c0_i32, %c0_i32_0 : i32, i32
  }
  func.func @transform_2(%arg0: i32) -> (i32, i32) {
    %c0_i32 = arith.constant 0 : i32
    %c0_i32_0 = arith.constant 0 : i32
    %c0_i32_1 = arith.constant 0 : i32
    return %c0_i32, %c0_i32_0 : i32, i32
  }
  func.func @transform_3(%arg0: i32) -> (i32, i32) {
    %c0_i32 = arith.constant 0 : i32
    %c0_i32_0 = arith.constant 0 : i32
    %c0_i32_1 = arith.constant 0 : i32
    return %c0_i32, %c0_i32_0 : i32, i32
  }
  func.func @transform_4(%arg0: i32) -> (i32, i32) {
    %c0_i32 = arith.constant 0 : i32
    %c0_i32_0 = arith.constant 0 : i32
    %c0_i32_1 = arith.constant 0 : i32
    return %c0_i32, %c0_i32_0 : i32, i32
  }
  func.func @transform_5(%arg0: i32) -> (i32, i32) {
    %c0_i32 = arith.constant 0 : i32
    %c0_i32_0 = arith.constant 0 : i32
    return %arg0, %c0_i32 : i32, i32
  }
}

</mosaic_0001>

<bundles_post_ra>
// kernel: tpu_custom_call.1
= control target key start
LH: loop header
LB: loop body
LE: loop exit
PB: predicated region body
PF: predicated region fallthrough
CT: control target
= control target key end

     0   :  { %vm41_vm0 = vcmask 261120   ;;  %vm221_vm1 = vcmask 7168   ;;  %s405_s1 = inlined_call_operand.vmem [shape: f32[32,128], index: 1, kind: input, shape index: {}]   ;;  %s406_s0 = inlined_call_operand.vmem [shape: f32[64,32], index: 0, kind: input, shape index: {}]   ;;  %s407_s4 = inlined_call_operand.<no memory space> [shape: f32[1,1], index: 4, kind: input, shape index: {}]   ;;  %s408_s2 = inlined_call_operand.vmem [shape: f32[1,128], index: 2, kind: input, shape index: {}]   ;;  %s409_s3 = inlined_call_operand.vmem [shape: f32[1,128], index: 3, kind: input, shape index: {}]   ;;  %s410_s5 = inlined_call_operand.vmem [shape: f32[64,1], index: 5, kind: output, shape index: {}]  }
   0x1   :  { %v30_v0 = vld [vmem:[%s405_s1] sm:$0xff]  ;;  %v31_v1 = vld [vmem:[%s405_s1 + $0x8] sm:$0xff]  ;;  %v32_v2 = vld [vmem:[%s405_s1 + $0x10] sm:$0xff]  ;;  %v10_v14 = vstv %s407_s4 }
   0x2   :  { %v276_v3 = vpack.c.bf16 %v31_v1, %v30_v0  ;;  %v33_v4 = vld [vmem:[%s405_s1 + $0x18] sm:$0xff]  ;;  %v22_v5 = vld [vmem:[%s406_s0] sm:$0xff]  ;;  %v23_v8 = vld [vmem:[%s406_s0 + $0x8] sm:$0xff]  ;;  %11 = vst [vmem:[#allocation2] sm:$0x1] %v10_v14 }
   0x3   :  { %v26_v6 = vld [vmem:[%s406_s0 + $0x20] sm:$0xff]  ;;  %v280_v7 = vpack.c.bf16 %v33_v4, %v32_v2  ;;  %264 = vmatprep.mubr.msk.f32.mxu0 %vm41_vm0, %v22_v5  ;;  %v27_v9 = vld [vmem:[%s406_s0 + $0x28] sm:$0xff]  ;;  %v24_v10 = vld [vmem:[%s406_s0 + $0x10] sm:$0xff] }
   0x4   :  { %270 = vmatprep.mubr.msk.f32.mxu1 %vm41_vm0, %v26_v6  ;;  %277 = vmatprep.subr.bf16.mxu0 %v276_v3  ;;  %v28_v11 = vld [vmem:[%s406_s0 + $0x30] sm:$0xff]  ;;  %v25_v12 = vld [vmem:[%s406_s0 + $0x18] sm:$0xff]  ;;  %v234_v16 = vld [vmem:[%s408_s2] ss:$0 sm:$0xff] }
   0x5   :  { %284 = vmatprep.subr.bf16.mxu1 %v276_v3  ;;  %279 = vmatpush3.bf16.msra.mxu0 %v276_v3  ;;  %v29_v13 = vld [vmem:[%s406_s0 + $0x38] sm:$0xff]  ;;  %v243_v24 = vld [vmem:[%s409_s3] ss:$0 sm:$0xff] }
   0x6   :  { %286 = vmatpush3.bf16.msra.mxu1 %v276_v3  ;;  %281 = vmatprep.subr.bf16.mxu0 %v280_v7 }
   0x7   :  { %285 = vmatprep.subr.bf16.mxu1 %v280_v7 }
   0x9   :  { %283 = vmatpush3.bf16.msra.mxu0 %v280_v7  ;;  %v210_v15 = vld [vmem:[#allocation2] sm:$0x1] }
   0xa   :  { %287 = vmatpush3.bf16.msra.mxu1 %v280_v7  ;;  %288 = vpush %v210_v15 }
   0xc   :  { %265 = vmatmul.mubr.msk.f32.vlgmr.msra.gmra.mrb[0].mxu0 %vm41_vm0, %v23_v8 }
   0xd   :  { %271 = vmatmul.mubr.msk.f32.vlgmr.msra.gmra.mrb[0].mxu1 %vm41_vm0, %v27_v9  ;;  %267 = vmatprep.mubr.msk.f32.mxu0 %vm41_vm0, %v24_v10 }
   0xe   :  { %273 = vmatprep.mubr.msk.f32.mxu1 %vm41_vm0, %v28_v11 }
  0x10   :  { %268 = vmatmul.mubr.msk.f32.gmra.mrb[2].mxu0 %vm41_vm0, %v25_v12 }
  0x11   :  { %274 = vmatmul.mubr.msk.f32.gmra.mrb[2].mxu1 %vm41_vm0, %v29_v13 }
  0x3b   :  { %s289_s2 = spop %288 }
  0x3c   :  { %v212_v50 = vstv %s289_s2 }
  0xdf   :  { %v266_v17 = vpop.f32.mrb[0].mxu0 }
  0xe0   :  { %v272_v18 = vpop.f32.mrb[0].mxu1  ;;  %v138_v19 = vadd.f32 %v266_v17, %v234_v16  ;;  %v132_v21 = vpop.f32.mrb[1].mxu0 }
  0xe1   :  { %v158_v20 = vadd.f32 %v272_v18, %v234_v16  ;;  %v152_v22 = vpop.f32.mrb[1].mxu1  ;;  %v133_v23 = vadd.f32 %v234_v16, %v132_v21 }
  0xe2   :  { %v172_v25 = vmax.f32 %v138_v19, 0.0  ;;  %v153_v27 = vadd.f32 %v234_v16, %v152_v22 }
  0xe3   :  { %v176_v26 = vmax.f32 %v158_v20, 0.0  ;;  %v269_v28 = vpop.f32.mrb[2].mxu0  ;;  %v171_v30 = vmax.f32 %v133_v23, 0.0 }
  0xe4   :  { %v275_v29 = vpop.f32.mrb[2].mxu1  ;;  %v148_v31 = vadd.f32 %v269_v28, %v234_v16  ;;  %v142_v32 = vpop.f32.mrb[3].mxu0  ;;  %v187_v34 = vmul.f32 %v243_v24, %v172_v25  ;;  %v175_v40 = vmax.f32 %v153_v27, 0.0 }
  0xe5   :  { %v191_v33 = vmul.f32 %v243_v24, %v176_v26  ;;  %v162_v35 = vpop.f32.mrb[3].mxu1  ;;  %v143_v36 = vadd.f32 %v234_v16, %v142_v32  ;;  %v168_v38 = vadd.f32 %v275_v29, %v234_v16  ;;  %v186_v43 = vmul.f32 %v243_v24, %v171_v30 }
  0xe6   :  { %v174_v37 = vmax.f32 %v148_v31, 0.0  ;;  %196 = vadd.xlane.f32.xlu0 %v187_v34  ;;  %v163_v39 = vadd.f32 %v234_v16, %v162_v35  ;;  %v190_v47 = vmul.f32 %v243_v24, %v175_v40 }
  0xe7   :  { %204 = vadd.xlane.f32.xlu1 %v191_v33  ;;  %v173_v41 = vmax.f32 %v143_v36, 0.0  ;;  %v178_v44 = vmax.f32 %v168_v38, 0.0 }
  0xe8   :  { %v189_v42 = vmul.f32 %v243_v24, %v174_v37  ;;  %v177_v45 = vmax.f32 %v163_v39, 0.0 }
  0xe9   :  { %v188_v46 = vmul.f32 %v243_v24, %v173_v41  ;;  %v193_v48 = vmul.f32 %v243_v24, %v178_v44 }
  0xea   :  { %194 = vadd.xlane.f32.xlu0 %v186_v43  ;;  %v192_v49 = vmul.f32 %v243_v24, %v177_v45 }
  0xeb   :  { %200 = vadd.xlane.f32.xlu1 %v189_v42 }
  0xee   :  { %202 = vadd.xlane.f32.xlu0 %v190_v47 }
  0xef   :  { %198 = vadd.xlane.f32.xlu1 %v188_v46 }
  0xf2   :  { %206 = vadd.xlane.f32.xlu0 %v192_v49 }
  0xf3   :  { %208 = vadd.xlane.f32.xlu1 %v193_v48 }
 0x173   :  { %v197_v52 = vpop.xlane.xlu0 %196 }
 0x174   :  { %v205_v51 = vpop.xlane.xlu1 %204  ;;  %v214_v54 = vadd.f32 %v212_v50, %v197_v52 }
 0x175   :  { %v218_v53 = vadd.f32 %v212_v50, %v205_v51 }
 0x176   :  { %223 = vst.msk [vmem:[%s410_s5 + $0x8] sm:$0xff] %vm221_vm1, %v214_v54 }
 0x177   :  { %227 = vst.msk [vmem:[%s410_s5 + $0x28] sm:$0xff] %vm221_vm1, %v218_v53  ;;  %v195_v56 = vpop.xlane.xlu0 %194 }
 0x178   :  { %v201_v55 = vpop.xlane.xlu1 %200  ;;  %v213_v58 = vadd.f32 %v212_v50, %v195_v56 }
 0x179   :  { %v216_v57 = vadd.f32 %v212_v50, %v201_v55 }
 0x17a   :  { %222 = vst.msk [vmem:[%s410_s5] sm:$0xff] %vm221_vm1, %v213_v58 }
 0x17b   :  { %225 = vst.msk [vmem:[%s410_s5 + $0x18] sm:$0xff] %vm221_vm1, %v216_v57  ;;  %v203_v60 = vpop.xlane.xlu0 %202 }
 0x17c   :  { %v199_v59 = vpop.xlane.xlu1 %198  ;;  %v217_v62 = vadd.f32 %v212_v50, %v203_v60 }
 0x17d   :  { %v215_v61 = vadd.f32 %v212_v50, %v199_v59 }
 0x17e   :  { %226 = vst.msk [vmem:[%s410_s5 + $0x20] sm:$0xff] %vm221_vm1, %v217_v62 }
 0x17f   :  { %224 = vst.msk [vmem:[%s410_s5 + $0x10] sm:$0xff] %vm221_vm1, %v215_v61  ;;  %v207_v0 = vpop.xlane.xlu0 %206 }
 0x180   :  { %v209_v63 = vpop.xlane.xlu1 %208  ;;  %v219_v2 = vadd.f32 %v212_v50, %v207_v0 }
 0x181   :  { %v220_v1 = vadd.f32 %v212_v50, %v209_v63 }
 0x182   :  { %228 = vst.msk [vmem:[%s410_s5 + $0x30] sm:$0xff] %vm221_vm1, %v219_v2 }
 0x183   :  { %229 = vst.msk [vmem:[%s410_s5 + $0x38] sm:$0xff] %vm221_vm1, %v220_v1 }

</bundles_post_ra>
